<compile_context>
chip_gen: v7x
topology: tpu7x:2x2x1
jax: 0.10.0
libtpu: 0.0.40
codegen_flags: <defaults>
</compile_context>

<pallas_src>
import functools

import jax
import jax.numpy as jnp
from jax.experimental import pallas as pl
from jax.experimental.pallas import tpu as pltpu


def _tversky_sums_kernel(pred_ref, tgt_ref, inter_ref, sump_ref, count_ref,
                         *, rows_total, split, need_mask, from_logits):
    """Accumulate per-class [intersection, sum(p), one-hot count] partials.

    pred_ref : (1, C, rows_tile, 128) logits tile -- per-class pixel planes
    tgt_ref  : (1, rows_tile, 128)    int32 labels
    *_ref out: (1, C, r_acc, 128) f32 lane-dense partial sums, resident
               across the row-tile grid axis (standard accumulator pattern).
    """
    g = pl.program_id(0)
    t = pl.program_id(1)
    num_t = pl.num_programs(1)

    n_classes = pred_ref.shape[1]
    rows_tile = pred_ref.shape[2]
    r_acc = inter_ref.shape[2]

    @pl.when(t == 0)
    def _():
        inter_ref[...] = jnp.zeros_like(inter_ref)
        sump_ref[...] = jnp.zeros_like(sump_ref)
        count_ref[...] = jnp.zeros_like(count_ref)

    labels = tgt_ref[0]                                     # (rows_tile, 128)
    planes = [pred_ref[0, c].astype(jnp.float32) for c in range(n_classes)]

    if from_logits:
        # Softmax across the class planes: pure elementwise VALU/EUP work,
        # every vreg is pixel-dense (no sublane waste, no XLU reductions).
        m = planes[0]
        for c in range(1, n_classes):
            m = jnp.maximum(m, planes[c])
        exps = [jnp.exp(pc - m) for pc in planes]
        den = exps[0]
        for c in range(1, n_classes):
            den = den + exps[c]
        # EUP approximate reciprocal + one Newton step (~f32 accuracy),
        # instead of an exact divide sequence on the binding VALU slot.
        r = pl.reciprocal(den, approx=True)
        r = r * (2.0 - den * r)
        probs = [ec * r for ec in exps]
    else:
        probs = planes

    def _fold(a):
        # (rows_tile, 128) -> (r_acc, 128), vreg-aligned VALU adds only.
        if r_acc == rows_tile:
            return a
        return a.reshape(rows_tile // r_acc, r_acc, 128).sum(axis=0)

    def _accumulate(valid):
        # valid: None (all pixels valid) or (rows_tile, 128) bool row mask.
        for c in range(n_classes):
            hot = labels == c
            pc = probs[c]
            if valid is not None:
                hot = jnp.logical_and(hot, valid)       # mask one-hot terms
                pc = jnp.where(valid, pc, 0.0)          # mask probabilities
            hot_f = hot.astype(jnp.float32)
            inter_ref[0, c] += _fold(pc * hot_f)
            sump_ref[0, c] += _fold(pc)
            count_ref[0, c] += _fold(hot_f)

    if not need_mask:
        _accumulate(None)
    else:
        # Global row-block index handled by this (g, t) step.
        rb = ((g % split) * num_t + t) if split > 1 else t
        row0 = rb * rows_tile
        is_full = row0 + rows_tile <= rows_total

        @pl.when(is_full)
        def _():
            _accumulate(None)

        @pl.when(jnp.logical_not(is_full))
        def _():
            row_iota = jax.lax.broadcasted_iota(jnp.int32, (rows_tile, 128), 0)
            _accumulate((row0 + row_iota) < rows_total)


def tversky_loss(pred, target, *, num_classes=6, alpha=0.5, beta=0.5,
                 smooth=1e-6, from_logits=True, tile_px=131072,
                 vmem_limit_bytes=32 * 1024 * 1024):
    """pred: (N, C, H, W) float logits, target: (N, H, W) int labels."""
    N, C, H, W = pred.shape
    assert C == num_classes
    HW = H * W
    # TODO(synk): support H*W not a multiple of 128 (needs a ragged lane-tail
    # mask path); common segmentation shapes all satisfy this.
    assert HW % 128 == 0, "H*W must be a multiple of 128"

    rows_total = HW // 128

    # Row tile (pixels per step = rows_tile * 128): large to amortize the
    # fixed per-grid-step overhead; a multiple of 8 sublanes unless the whole
    # image is smaller than one vreg column.
    rows_target = max(8, tile_px // 128)
    if rows_total < 8:
        rows_tile = rows_total
    else:
        rows_tile = min((rows_target // 8) * 8, (rows_total // 8) * 8)
    r_acc = 8 if rows_tile % 8 == 0 else rows_tile

    nrb = pl.cdiv(rows_total, rows_tile)            # row blocks per image
    # With an odd batch (especially N == 1), split the row range in two on a
    # leading parallel axis so both v7x TensorCores get work.
    split = 2 if (N % 2 == 1 and nrb >= 2) else 1
    num_t = pl.cdiv(nrb, split)
    need_mask = (split * num_t * rows_tile) != rows_total
    G = N * split

    # Free reshapes only -- no padding, no dtype cast pass over HBM.
    pred4 = pred.reshape(N, C, rows_total, 128)
    tgt3 = target.reshape(N, rows_total, 128)

    def _img(g):
        return g // split if split > 1 else g

    def _rb(g, t):
        rb = (g % split) * num_t + t if split > 1 else t
        if split * num_t > nrb:
            # Overrun blocks (odd nrb split across 2 TCs): clamp the DMA to a
            # valid block; the in-kernel row mask zeroes their contribution.
            rb = jnp.minimum(rb, nrb - 1)
        return rb

    pred_spec = pl.BlockSpec((1, C, rows_tile, 128),
                             lambda g, t: (_img(g), 0, _rb(g, t), 0))
    tgt_spec = pl.BlockSpec((1, rows_tile, 128),
                            lambda g, t: (_img(g), _rb(g, t), 0))
    acc_spec = pl.BlockSpec((1, C, r_acc, 128), lambda g, t: (g, 0, 0, 0))
    acc_shape = jax.ShapeDtypeStruct((G, C, r_acc, 128), jnp.float32)

    kernel = functools.partial(_tversky_sums_kernel,
                               rows_total=rows_total, split=split,
                               need_mask=need_mask, from_logits=from_logits)

    inter, sump, count = pl.pallas_call(
        kernel,
        out_shape=[acc_shape, acc_shape, acc_shape],
        grid_spec=pltpu.PrefetchScalarGridSpec(
            num_scalar_prefetch=0,
            grid=(G, num_t),
            in_specs=[pred_spec, tgt_spec],
            out_specs=[acc_spec, acc_spec, acc_spec],
        ),
        compiler_params=pltpu.CompilerParams(
            # Group axis (images x optional row-split) is independent work
            # (megacore-parallel on v7x); the row-tile axis carries the
            # resident lane-dense accumulators.
            dimension_semantics=("parallel", "arbitrary"),
            vmem_limit_bytes=vmem_limit_bytes,
        ),
    )(pred4, tgt3)

    # Tiny finalize in plain JAX: fold the lane-dense partials and form the
    # loss (fps = sum(p) - inter, fns = count - inter).
    inter = jnp.sum(inter, axis=(0, 2, 3))          # (C,)
    sump = jnp.sum(sump, axis=(0, 2, 3))
    count = jnp.sum(count, axis=(0, 2, 3))
    fps = sump - inter
    fns = count - inter
    numerator = inter + smooth
    denominator = inter + alpha * fns + beta * fps + smooth
    tversky_per_class = numerator / denominator
    return -jnp.log(jnp.mean(tversky_per_class) + smooth)


def _tversky_loss_ref(pred, target, *, num_classes=6, alpha=0.5, beta=0.5,
                      smooth=1e-6):
    p = jax.nn.softmax(pred.astype(jnp.float32), axis=1)        # (N,C,H,W)
    onehot = jax.nn.one_hot(target, num_classes, dtype=jnp.float32)
    onehot = jnp.transpose(onehot, (0, 3, 1, 2))                # (N,C,H,W)
    inter = jnp.sum(p * onehot, axis=(0, 2, 3))
    fps = jnp.sum(p * (1.0 - onehot), axis=(0, 2, 3))
    fns = jnp.sum((1.0 - p) * onehot, axis=(0, 2, 3))
    tv = (inter + smooth) / (inter + alpha * fns + beta * fps + smooth)
    return -jnp.log(jnp.mean(tv) + smooth)


if __name__ == "__main__":
    key = jax.random.PRNGKey(0)
    kp, kt = jax.random.split(key)

    N, C, H, W = 2, 6, 16, 16
    pred = jax.random.normal(kp, (N, C, H, W), dtype=jnp.float32)
    target = jax.random.randint(kt, (N, H, W), 0, C, dtype=jnp.int32)

    loss = jax.jit(tversky_loss)(pred, target)
    loss = jax.block_until_ready(loss)

    ref = _tversky_loss_ref(pred, target)
    assert jnp.allclose(loss, ref, rtol=1e-5, atol=1e-5), (loss, ref)

    print("KERNEL_OK")
</pallas_src>

<mosaic_0001>
module attributes {stable_mosaic.version = 11 : i64} {
  func.func @_tversky_sums_kernel(%arg0: i32, %arg1: i32, %arg2: memref<1x6x2x128xf32, #tpu.memory_space<vmem>>, %arg3: memref<1x2x128xi32, #tpu.memory_space<vmem>>, %arg4: memref<1x6x2x128xf32, #tpu.memory_space<vmem>>, %arg5: memref<1x6x2x128xf32, #tpu.memory_space<vmem>>, %arg6: memref<1x6x2x128xf32, #tpu.memory_space<vmem>>) attributes {dimension_semantics = [#tpu.dimension_semantics<parallel>, #tpu.dimension_semantics<arbitrary>], iteration_bounds = array<i64: 2, 1>, scalar_prefetch = 0 : i64, scratch_operands = 0 : i64, tpu.core_type = #tpu.core_type<tc>, window_params = [{transform_indices = @transform_0, window_bounds = array<i64: 1, 6, 2, 128>}, {transform_indices = @transform_1, window_bounds = array<i64: 1, 2, 128>}, {transform_indices = @transform_2, window_bounds = array<i64: 1, 6, 2, 128>}, {transform_indices = @transform_3, window_bounds = array<i64: 1, 6, 2, 128>}, {transform_indices = @transform_4, window_bounds = array<i64: 1, 6, 2, 128>}]} {
    %c0_i32 = arith.constant 0 : i32
    %0 = arith.cmpi eq, %arg1, %c0_i32 : i32
    %1 = arith.extui %0 : i1 to i32
    %c0_i32_0 = arith.constant 0 : i32
    %2 = arith.cmpi ne, %1, %c0_i32_0 : i32
    scf.if %2 {
      %cst_167 = arith.constant 0.000000e+00 : f32
      %188 = vector.broadcast %cst_167 : f32 to vector<1x6x2x128xf32>
      %c0_168 = arith.constant 0 : index
      %c0_169 = arith.constant 0 : index
      %c0_170 = arith.constant 0 : index
      %c0_171 = arith.constant 0 : index
      %189 = vector.load %arg4[%c0_168, %c0_169, %c0_170, %c0_171] : memref<1x6x2x128xf32, #tpu.memory_space<vmem>>, vector<1x6x2x128xf32>
      tpu.vector_store %arg4[%c0_168, %c0_169, %c0_170, %c0_171], %188 {strides = array<i32>} : memref<1x6x2x128xf32, #tpu.memory_space<vmem>>, vector<1x6x2x128xf32>,
      %cst_172 = arith.constant 0.000000e+00 : f32
      %190 = vector.broadcast %cst_172 : f32 to vector<1x6x2x128xf32>
      %c0_173 = arith.constant 0 : index
      %c0_174 = arith.constant 0 : index
      %c0_175 = arith.constant 0 : index
      %c0_176 = arith.constant 0 : index
      %191 = vector.load %arg5[%c0_173, %c0_174, %c0_175, %c0_176] : memref<1x6x2x128xf32, #tpu.memory_space<vmem>>, vector<1x6x2x128xf32>
      tpu.vector_store %arg5[%c0_173, %c0_174, %c0_175, %c0_176], %190 {strides = array<i32>} : memref<1x6x2x128xf32, #tpu.memory_space<vmem>>, vector<1x6x2x128xf32>,
      %cst_177 = arith.constant 0.000000e+00 : f32
      %192 = vector.broadcast %cst_177 : f32 to vector<1x6x2x128xf32>
      %c0_178 = arith.constant 0 : index
      %c0_179 = arith.constant 0 : index
      %c0_180 = arith.constant 0 : index
      %c0_181 = arith.constant 0 : index
      %193 = vector.load %arg6[%c0_178, %c0_179, %c0_180, %c0_181] : memref<1x6x2x128xf32, #tpu.memory_space<vmem>>, vector<1x6x2x128xf32>
      tpu.vector_store %arg6[%c0_178, %c0_179, %c0_180, %c0_181], %192 {strides = array<i32>} : memref<1x6x2x128xf32, #tpu.memory_space<vmem>>, vector<1x6x2x128xf32>,
    } else {
    }
    %c0 = arith.constant 0 : index
    %c0_1 = arith.constant 0 : index
    %c0_2 = arith.constant 0 : index
    %3 = vector.load %arg3[%c0, %c0_1, %c0_2] : memref<1x2x128xi32, #tpu.memory_space<vmem>>, vector<1x2x128xi32>
    %4 = vector.shape_cast %3 : vector<1x2x128xi32> to vector<2x128xi32>
    %c0_3 = arith.constant 0 : index
    %c0_4 = arith.constant 0 : index
    %c0_5 = arith.constant 0 : index
    %c0_6 = arith.constant 0 : index
    %5 = vector.load %arg2[%c0_3, %c0_4, %c0_5, %c0_6] : memref<1x6x2x128xf32, #tpu.memory_space<vmem>>, vector<1x1x2x128xf32>
    %6 = vector.shape_cast %5 : vector<1x1x2x128xf32> to vector<2x128xf32>
    %c0_7 = arith.constant 0 : index
    %c1 = arith.constant 1 : index
    %c0_8 = arith.constant 0 : index
    %c0_9 = arith.constant 0 : index
    %7 = vector.load %arg2[%c0_7, %c1, %c0_8, %c0_9] : memref<1x6x2x128xf32, #tpu.memory_space<vmem>>, vector<1x1x2x128xf32>
    %8 = vector.shape_cast %7 : vector<1x1x2x128xf32> to vector<2x128xf32>
    %c0_10 = arith.constant 0 : index
    %c2 = arith.constant 2 : index
    %c0_11 = arith.constant 0 : index
    %c0_12 = arith.constant 0 : index
    %9 = vector.load %arg2[%c0_10, %c2, %c0_11, %c0_12] : memref<1x6x2x128xf32, #tpu.memory_space<vmem>>, vector<1x1x2x128xf32>
    %10 = vector.shape_cast %9 : vector<1x1x2x128xf32> to vector<2x128xf32>
    %c0_13 = arith.constant 0 : index
    %c3 = arith.constant 3 : index
    %c0_14 = arith.constant 0 : index
    %c0_15 = arith.constant 0 : index
    %11 = vector.load %arg2[%c0_13, %c3, %c0_14, %c0_15] : memref<1x6x2x128xf32, #tpu.memory_space<vmem>>, vector<1x1x2x128xf32>
    %12 = vector.shape_cast %11 : vector<1x1x2x128xf32> to vector<2x128xf32>
    %c0_16 = arith.constant 0 : index
    %c4 = arith.constant 4 : index
    %c0_17 = arith.constant 0 : index
    %c0_18 = arith.constant 0 : index
    %13 = vector.load %arg2[%c0_16, %c4, %c0_17, %c0_18] : memref<1x6x2x128xf32, #tpu.memory_space<vmem>>, vector<1x1x2x128xf32>
    %14 = vector.shape_cast %13 : vector<1x1x2x128xf32> to vector<2x128xf32>
    %c0_19 = arith.constant 0 : index
    %c5 = arith.constant 5 : index
    %c0_20 = arith.constant 0 : index
    %c0_21 = arith.constant 0 : index
    %15 = vector.load %arg2[%c0_19, %c5, %c0_20, %c0_21] : memref<1x6x2x128xf32, #tpu.memory_space<vmem>>, vector<1x1x2x128xf32>
    %16 = vector.shape_cast %15 : vector<1x1x2x128xf32> to vector<2x128xf32>
    %17 = arith.maximumf %6, %8 : vector<2x128xf32>
    %18 = arith.maximumf %17, %10 : vector<2x128xf32>
    %19 = arith.maximumf %18, %12 : vector<2x128xf32>
    %20 = arith.maximumf %19, %14 : vector<2x128xf32>
    %21 = arith.maximumf %20, %16 : vector<2x128xf32>
    %22 = arith.subf %6, %21 : vector<2x128xf32>
    %23 = math.exp %22 : vector<2x128xf32>
    %24 = arith.subf %8, %21 : vector<2x128xf32>
    %25 = math.exp %24 : vector<2x128xf32>
    %26 = arith.subf %10, %21 : vector<2x128xf32>
    %27 = math.exp %26 : vector<2x128xf32>
    %28 = arith.subf %12, %21 : vector<2x128xf32>
    %29 = math.exp %28 : vector<2x128xf32>
    %30 = arith.subf %14, %21 : vector<2x128xf32>
    %31 = math.exp %30 : vector<2x128xf32>
    %32 = arith.subf %16, %21 : vector<2x128xf32>
    %33 = math.exp %32 : vector<2x128xf32>
    %34 = arith.addf %23, %25 : vector<2x128xf32>
    %35 = arith.addf %34, %27 : vector<2x128xf32>
    %36 = arith.addf %35, %29 : vector<2x128xf32>
    %37 = arith.addf %36, %31 : vector<2x128xf32>
    %38 = arith.addf %37, %33 : vector<2x128xf32>
    %39 = tpu.reciprocal %38 {approx = true} : vector<2x128xf32> -> vector<2x128xf32>
    %40 = arith.mulf %38, %39 : vector<2x128xf32>
    %cst = arith.constant 2.000000e+00 : f32
    %41 = vector.broadcast %cst : f32 to vector<2x128xf32>
    %42 = arith.subf %41, %40 : vector<2x128xf32>
    %43 = arith.mulf %39, %42 : vector<2x128xf32>
    %44 = arith.mulf %23, %43 : vector<2x128xf32>
    %45 = arith.mulf %25, %43 : vector<2x128xf32>
    %46 = arith.mulf %27, %43 : vector<2x128xf32>
    %47 = arith.mulf %29, %43 : vector<2x128xf32>
    %48 = arith.mulf %31, %43 : vector<2x128xf32>
    %49 = arith.mulf %33, %43 : vector<2x128xf32>
    %c0_i32_22 = arith.constant 0 : i32
    %50 = vector.broadcast %c0_i32_22 : i32 to vector<2x128xi32>
    %51 = arith.cmpi eq, %4, %50 : vector<2x128xi32>
    %52 = arith.extui %51 : vector<2x128xi1> to vector<2x128xi32>
    %53 = arith.sitofp %52 : vector<2x128xi32> to vector<2x128xf32>
    %c0_23 = arith.constant 0 : index
    %c0_24 = arith.constant 0 : index
    %c0_25 = arith.constant 0 : index
    %c0_26 = arith.constant 0 : index
    %54 = vector.load %arg4[%c0_23, %c0_24, %c0_25, %c0_26] : memref<1x6x2x128xf32, #tpu.memory_space<vmem>>, vector<1x1x2x128xf32>
    %55 = vector.shape_cast %54 : vector<1x1x2x128xf32> to vector<2x128xf32>
    %56 = arith.mulf %44, %53 : vector<2x128xf32>
    %57 = arith.addf %55, %56 : vector<2x128xf32>
    %c0_27 = arith.constant 0 : index
    %c0_28 = arith.constant 0 : index
    %c0_29 = arith.constant 0 : index
    %c0_30 = arith.constant 0 : index
    %58 = vector.load %arg4[%c0_27, %c0_28, %c0_29, %c0_30] : memref<1x6x2x128xf32, #tpu.memory_space<vmem>>, vector<1x1x2x128xf32>
    %59 = vector.shape_cast %58 : vector<1x1x2x128xf32> to vector<2x128xf32>
    %60 = vector.shape_cast %57 : vector<2x128xf32> to vector<1x1x2x128xf32>
    tpu.vector_store %arg4[%c0_27, %c0_28, %c0_29, %c0_30], %60 {strides = array<i32>} : memref<1x6x2x128xf32, #tpu.memory_space<vmem>>, vector<1x1x2x128xf32>,
    %c0_31 = arith.constant 0 : index
    %c0_32 = arith.constant 0 : index
    %c0_33 = arith.constant 0 : index
    %c0_34 = arith.constant 0 : index
    %61 = vector.load %arg5[%c0_31, %c0_32, %c0_33, %c0_34] : memref<1x6x2x128xf32, #tpu.memory_space<vmem>>, vector<1x1x2x128xf32>
    %62 = vector.shape_cast %61 : vector<1x1x2x128xf32> to vector<2x128xf32>
    %63 = arith.addf %62, %44 : vector<2x128xf32>
    %c0_35 = arith.constant 0 : index
    %c0_36 = arith.constant 0 : index
    %c0_37 = arith.constant 0 : index
    %c0_38 = arith.constant 0 : index
    %64 = vector.load %arg5[%c0_35, %c0_36, %c0_37, %c0_38] : memref<1x6x2x128xf32, #tpu.memory_space<vmem>>, vector<1x1x2x128xf32>
    %65 = vector.shape_cast %64 : vector<1x1x2x128xf32> to vector<2x128xf32>
    %66 = vector.shape_cast %63 : vector<2x128xf32> to vector<1x1x2x128xf32>
    tpu.vector_store %arg5[%c0_35, %c0_36, %c0_37, %c0_38], %66 {strides = array<i32>} : memref<1x6x2x128xf32, #tpu.memory_space<vmem>>, vector<1x1x2x128xf32>,
    %c0_39 = arith.constant 0 : index
    %c0_40 = arith.constant 0 : index
    %c0_41 = arith.constant 0 : index
    %c0_42 = arith.constant 0 : index
    %67 = vector.load %arg6[%c0_39, %c0_40, %c0_41, %c0_42] : memref<1x6x2x128xf32, #tpu.memory_space<vmem>>, vector<1x1x2x128xf32>
    %68 = vector.shape_cast %67 : vector<1x1x2x128xf32> to vector<2x128xf32>
    %69 = arith.addf %68, %53 : vector<2x128xf32>
    %c0_43 = arith.constant 0 : index
    %c0_44 = arith.constant 0 : index
    %c0_45 = arith.constant 0 : index
    %c0_46 = arith.constant 0 : index
    %70 = vector.load %arg6[%c0_43, %c0_44, %c0_45, %c0_46] : memref<1x6x2x128xf32, #tpu.memory_space<vmem>>, vector<1x1x2x128xf32>
    %71 = vector.shape_cast %70 : vector<1x1x2x128xf32> to vector<2x128xf32>
    %72 = vector.shape_cast %69 : vector<2x128xf32> to vector<1x1x2x128xf32>
    tpu.vector_store %arg6[%c0_43, %c0_44, %c0_45, %c0_46], %72 {strides = array<i32>} : memref<1x6x2x128xf32, #tpu.memory_space<vmem>>, vector<1x1x2x128xf32>,
    %c1_i32 = arith.constant 1 : i32
    %73 = vector.broadcast %c1_i32 : i32 to vector<2x128xi32>
    %74 = arith.cmpi eq, %4, %73 : vector<2x128xi32>
    %75 = arith.extui %74 : vector<2x128xi1> to vector<2x128xi32>
    %76 = arith.sitofp %75 : vector<2x128xi32> to vector<2x128xf32>
    %c0_47 = arith.constant 0 : index
    %c1_48 = arith.constant 1 : index
    %c0_49 = arith.constant 0 : index
    %c0_50 = arith.constant 0 : index
    %77 = vector.load %arg4[%c0_47, %c1_48, %c0_49, %c0_50] : memref<1x6x2x128xf32, #tpu.memory_space<vmem>>, vector<1x1x2x128xf32>
    %78 = vector.shape_cast %77 : vector<1x1x2x128xf32> to vector<2x128xf32>
    %79 = arith.mulf %45, %76 : vector<2x128xf32>
    %80 = arith.addf %78, %79 : vector<2x128xf32>
    %c0_51 = arith.constant 0 : index
    %c1_52 = arith.constant 1 : index
    %c0_53 = arith.constant 0 : index
    %c0_54 = arith.constant 0 : index
    %81 = vector.load %arg4[%c0_51, %c1_52, %c0_53, %c0_54] : memref<1x6x2x128xf32, #tpu.memory_space<vmem>>, vector<1x1x2x128xf32>
    %82 = vector.shape_cast %81 : vector<1x1x2x128xf32> to vector<2x128xf32>
    %83 = vector.shape_cast %80 : vector<2x128xf32> to vector<1x1x2x128xf32>
    tpu.vector_store %arg4[%c0_51, %c1_52, %c0_53, %c0_54], %83 {strides = array<i32>} : memref<1x6x2x128xf32, #tpu.memory_space<vmem>>, vector<1x1x2x128xf32>,
    %c0_55 = arith.constant 0 : index
    %c1_56 = arith.constant 1 : index
    %c0_57 = arith.constant 0 : index
    %c0_58 = arith.constant 0 : index
    %84 = vector.load %arg5[%c0_55, %c1_56, %c0_57, %c0_58] : memref<1x6x2x128xf32, #tpu.memory_space<vmem>>, vector<1x1x2x128xf32>
    %85 = vector.shape_cast %84 : vector<1x1x2x128xf32> to vector<2x128xf32>
    %86 = arith.addf %85, %45 : vector<2x128xf32>
    %c0_59 = arith.constant 0 : index
    %c1_60 = arith.constant 1 : index
    %c0_61 = arith.constant 0 : index
    %c0_62 = arith.constant 0 : index
    %87 = vector.load %arg5[%c0_59, %c1_60, %c0_61, %c0_62] : memref<1x6x2x128xf32, #tpu.memory_space<vmem>>, vector<1x1x2x128xf32>
    %88 = vector.shape_cast %87 : vector<1x1x2x128xf32> to vector<2x128xf32>
    %89 = vector.shape_cast %86 : vector<2x128xf32> to vector<1x1x2x128xf32>
    tpu.vector_store %arg5[%c0_59, %c1_60, %c0_61, %c0_62], %89 {strides = array<i32>} : memref<1x6x2x128xf32, #tpu.memory_space<vmem>>, vector<1x1x2x128xf32>,
    %c0_63 = arith.constant 0 : index
    %c1_64 = arith.constant 1 : index
    %c0_65 = arith.constant 0 : index
    %c0_66 = arith.constant 0 : index
    %90 = vector.load %arg6[%c0_63, %c1_64, %c0_65, %c0_66] : memref<1x6x2x128xf32, #tpu.memory_space<vmem>>, vector<1x1x2x128xf32>
    %91 = vector.shape_cast %90 : vector<1x1x2x128xf32> to vector<2x128xf32>
    %92 = arith.addf %91, %76 : vector<2x128xf32>
    %c0_67 = arith.constant 0 : index
    %c1_68 = arith.constant 1 : index
    %c0_69 = arith.constant 0 : index
    %c0_70 = arith.constant 0 : index
    %93 = vector.load %arg6[%c0_67, %c1_68, %c0_69, %c0_70] : memref<1x6x2x128xf32, #tpu.memory_space<vmem>>, vector<1x1x2x128xf32>
    %94 = vector.shape_cast %93 : vector<1x1x2x128xf32> to vector<2x128xf32>
    %95 = vector.shape_cast %92 : vector<2x128xf32> to vector<1x1x2x128xf32>
    tpu.vector_store %arg6[%c0_67, %c1_68, %c0_69, %c0_70], %95 {strides = array<i32>} : memref<1x6x2x128xf32, #tpu.memory_space<vmem>>, vector<1x1x2x128xf32>,
    %c2_i32 = arith.constant 2 : i32
    %96 = vector.broadcast %c2_i32 : i32 to vector<2x128xi32>
    %97 = arith.cmpi eq, %4, %96 : vector<2x128xi32>
    %98 = arith.extui %97 : vector<2x128xi1> to vector<2x128xi32>
    %99 = arith.sitofp %98 : vector<2x128xi32> to vector<2x128xf32>
    %c0_71 = arith.constant 0 : index
    %c2_72 = arith.constant 2 : index
    %c0_73 = arith.constant 0 : index
    %c0_74 = arith.constant 0 : index
    %100 = vector.load %arg4[%c0_71, %c2_72, %c0_73, %c0_74] : memref<1x6x2x128xf32, #tpu.memory_space<vmem>>, vector<1x1x2x128xf32>
    %101 = vector.shape_cast %100 : vector<1x1x2x128xf32> to vector<2x128xf32>
    %102 = arith.mulf %46, %99 : vector<2x128xf32>
    %103 = arith.addf %101, %102 : vector<2x128xf32>
    %c0_75 = arith.constant 0 : index
    %c2_76 = arith.constant 2 : index
    %c0_77 = arith.constant 0 : index
    %c0_78 = arith.constant 0 : index
    %104 = vector.load %arg4[%c0_75, %c2_76, %c0_77, %c0_78] : memref<1x6x2x128xf32, #tpu.memory_space<vmem>>, vector<1x1x2x128xf32>
    %105 = vector.shape_cast %104 : vector<1x1x2x128xf32> to vector<2x128xf32>
    %106 = vector.shape_cast %103 : vector<2x128xf32> to vector<1x1x2x128xf32>
    tpu.vector_store %arg4[%c0_75, %c2_76, %c0_77, %c0_78], %106 {strides = array<i32>} : memref<1x6x2x128xf32, #tpu.memory_space<vmem>>, vector<1x1x2x128xf32>,
    %c0_79 = arith.constant 0 : index
    %c2_80 = arith.constant 2 : index
    %c0_81 = arith.constant 0 : index
    %c0_82 = arith.constant 0 : index
    %107 = vector.load %arg5[%c0_79, %c2_80, %c0_81, %c0_82] : memref<1x6x2x128xf32, #tpu.memory_space<vmem>>, vector<1x1x2x128xf32>
    %108 = vector.shape_cast %107 : vector<1x1x2x128xf32> to vector<2x128xf32>
    %109 = arith.addf %108, %46 : vector<2x128xf32>
    %c0_83 = arith.constant 0 : index
    %c2_84 = arith.constant 2 : index
    %c0_85 = arith.constant 0 : index
    %c0_86 = arith.constant 0 : index
    %110 = vector.load %arg5[%c0_83, %c2_84, %c0_85, %c0_86] : memref<1x6x2x128xf32, #tpu.memory_space<vmem>>, vector<1x1x2x128xf32>
    %111 = vector.shape_cast %110 : vector<1x1x2x128xf32> to vector<2x128xf32>
    %112 = vector.shape_cast %109 : vector<2x128xf32> to vector<1x1x2x128xf32>
    tpu.vector_store %arg5[%c0_83, %c2_84, %c0_85, %c0_86], %112 {strides = array<i32>} : memref<1x6x2x128xf32, #tpu.memory_space<vmem>>, vector<1x1x2x128xf32>,
    %c0_87 = arith.constant 0 : index
    %c2_88 = arith.constant 2 : index
    %c0_89 = arith.constant 0 : index
    %c0_90 = arith.constant 0 : index
    %113 = vector.load %arg6[%c0_87, %c2_88, %c0_89, %c0_90] : memref<1x6x2x128xf32, #tpu.memory_space<vmem>>, vector<1x1x2x128xf32>
    %114 = vector.shape_cast %113 : vector<1x1x2x128xf32> to vector<2x128xf32>
    %115 = arith.addf %114, %99 : vector<2x128xf32>
    %c0_91 = arith.constant 0 : index
    %c2_92 = arith.constant 2 : index
    %c0_93 = arith.constant 0 : index
    %c0_94 = arith.constant 0 : index
    %116 = vector.load %arg6[%c0_91, %c2_92, %c0_93, %c0_94] : memref<1x6x2x128xf32, #tpu.memory_space<vmem>>, vector<1x1x2x128xf32>
    %117 = vector.shape_cast %116 : vector<1x1x2x128xf32> to vector<2x128xf32>
    %118 = vector.shape_cast %115 : vector<2x128xf32> to vector<1x1x2x128xf32>
    tpu.vector_store %arg6[%c0_91, %c2_92, %c0_93, %c0_94], %118 {strides = array<i32>} : memref<1x6x2x128xf32, #tpu.memory_space<vmem>>, vector<1x1x2x128xf32>,
    %c3_i32 = arith.constant 3 : i32
    %119 = vector.broadcast %c3_i32 : i32 to vector<2x128xi32>
    %120 = arith.cmpi eq, %4, %119 : vector<2x128xi32>
    %121 = arith.extui %120 : vector<2x128xi1> to vector<2x128xi32>
    %122 = arith.sitofp %121 : vector<2x128xi32> to vector<2x128xf32>
    %c0_95 = arith.constant 0 : index
    %c3_96 = arith.constant 3 : index
    %c0_97 = arith.constant 0 : index
    %c0_98 = arith.constant 0 : index
    %123 = vector.load %arg4[%c0_95, %c3_96, %c0_97, %c0_98] : memref<1x6x2x128xf32, #tpu.memory_space<vmem>>, vector<1x1x2x128xf32>
    %124 = vector.shape_cast %123 : vector<1x1x2x128xf32> to vector<2x128xf32>
    %125 = arith.mulf %47, %122 : vector<2x128xf32>
    %126 = arith.addf %124, %125 : vector<2x128xf32>
    %c0_99 = arith.constant 0 : index
    %c3_100 = arith.constant 3 : index
    %c0_101 = arith.constant 0 : index
    %c0_102 = arith.constant 0 : index
    %127 = vector.load %arg4[%c0_99, %c3_100, %c0_101, %c0_102] : memref<1x6x2x128xf32, #tpu.memory_space<vmem>>, vector<1x1x2x128xf32>
    %128 = vector.shape_cast %127 : vector<1x1x2x128xf32> to vector<2x128xf32>
    %129 = vector.shape_cast %126 : vector<2x128xf32> to vector<1x1x2x128xf32>
    tpu.vector_store %arg4[%c0_99, %c3_100, %c0_101, %c0_102], %129 {strides = array<i32>} : memref<1x6x2x128xf32, #tpu.memory_space<vmem>>, vector<1x1x2x128xf32>,
    %c0_103 = arith.constant 0 : index
    %c3_104 = arith.constant 3 : index
    %c0_105 = arith.constant 0 : index
    %c0_106 = arith.constant 0 : index
    %130 = vector.load %arg5[%c0_103, %c3_104, %c0_105, %c0_106] : memref<1x6x2x128xf32, #tpu.memory_space<vmem>>, vector<1x1x2x128xf32>
    %131 = vector.shape_cast %130 : vector<1x1x2x128xf32> to vector<2x128xf32>
    %132 = arith.addf %131, %47 : vector<2x128xf32>
    %c0_107 = arith.constant 0 : index
    %c3_108 = arith.constant 3 : index
    %c0_109 = arith.constant 0 : index
    %c0_110 = arith.constant 0 : index
    %133 = vector.load %arg5[%c0_107, %c3_108, %c0_109, %c0_110] : memref<1x6x2x128xf32, #tpu.memory_space<vmem>>, vector<1x1x2x128xf32>
    %134 = vector.shape_cast %133 : vector<1x1x2x128xf32> to vector<2x128xf32>
    %135 = vector.shape_cast %132 : vector<2x128xf32> to vector<1x1x2x128xf32>
    tpu.vector_store %arg5[%c0_107, %c3_108, %c0_109, %c0_110], %135 {strides = array<i32>} : memref<1x6x2x128xf32, #tpu.memory_space<vmem>>, vector<1x1x2x128xf32>,
    %c0_111 = arith.constant 0 : index
    %c3_112 = arith.constant 3 : index
    %c0_113 = arith.constant 0 : index
    %c0_114 = arith.constant 0 : index
    %136 = vector.load %arg6[%c0_111, %c3_112, %c0_113, %c0_114] : memref<1x6x2x128xf32, #tpu.memory_space<vmem>>, vector<1x1x2x128xf32>
    %137 = vector.shape_cast %136 : vector<1x1x2x128xf32> to vector<2x128xf32>
    %138 = arith.addf %137, %122 : vector<2x128xf32>
    %c0_115 = arith.constant 0 : index
    %c3_116 = arith.constant 3 : index
    %c0_117 = arith.constant 0 : index
    %c0_118 = arith.constant 0 : index
    %139 = vector.load %arg6[%c0_115, %c3_116, %c0_117, %c0_118] : memref<1x6x2x128xf32, #tpu.memory_space<vmem>>, vector<1x1x2x128xf32>
    %140 = vector.shape_cast %139 : vector<1x1x2x128xf32> to vector<2x128xf32>
    %141 = vector.shape_cast %138 : vector<2x128xf32> to vector<1x1x2x128xf32>
    tpu.vector_store %arg6[%c0_115, %c3_116, %c0_117, %c0_118], %141 {strides = array<i32>} : memref<1x6x2x128xf32, #tpu.memory_space<vmem>>, vector<1x1x2x128xf32>,
    %c4_i32 = arith.constant 4 : i32
    %142 = vector.broadcast %c4_i32 : i32 to vector<2x128xi32>
    %143 = arith.cmpi eq, %4, %142 : vector<2x128xi32>
    %144 = arith.extui %143 : vector<2x128xi1> to vector<2x128xi32>
    %145 = arith.sitofp %144 : vector<2x128xi32> to vector<2x128xf32>
    %c0_119 = arith.constant 0 : index
    %c4_120 = arith.constant 4 : index
    %c0_121 = arith.constant 0 : index
    %c0_122 = arith.constant 0 : index
    %146 = vector.load %arg4[%c0_119, %c4_120, %c0_121, %c0_122] : memref<1x6x2x128xf32, #tpu.memory_space<vmem>>, vector<1x1x2x128xf32>
    %147 = vector.shape_cast %146 : vector<1x1x2x128xf32> to vector<2x128xf32>
    %148 = arith.mulf %48, %145 : vector<2x128xf32>
    %149 = arith.addf %147, %148 : vector<2x128xf32>
    %c0_123 = arith.constant 0 : index
    %c4_124 = arith.constant 4 : index
    %c0_125 = arith.constant 0 : index
    %c0_126 = arith.constant 0 : index
    %150 = vector.load %arg4[%c0_123, %c4_124, %c0_125, %c0_126] : memref<1x6x2x128xf32, #tpu.memory_space<vmem>>, vector<1x1x2x128xf32>
    %151 = vector.shape_cast %150 : vector<1x1x2x128xf32> to vector<2x128xf32>
    %152 = vector.shape_cast %149 : vector<2x128xf32> to vector<1x1x2x128xf32>
    tpu.vector_store %arg4[%c0_123, %c4_124, %c0_125, %c0_126], %152 {strides = array<i32>} : memref<1x6x2x128xf32, #tpu.memory_space<vmem>>, vector<1x1x2x128xf32>,
    %c0_127 = arith.constant 0 : index
    %c4_128 = arith.constant 4 : index
    %c0_129 = arith.constant 0 : index
    %c0_130 = arith.constant 0 : index
    %153 = vector.load %arg5[%c0_127, %c4_128, %c0_129, %c0_130] : memref<1x6x2x128xf32, #tpu.memory_space<vmem>>, vector<1x1x2x128xf32>
    %154 = vector.shape_cast %153 : vector<1x1x2x128xf32> to vector<2x128xf32>
    %155 = arith.addf %154, %48 : vector<2x128xf32>
    %c0_131 = arith.constant 0 : index
    %c4_132 = arith.constant 4 : index
    %c0_133 = arith.constant 0 : index
    %c0_134 = arith.constant 0 : index
    %156 = vector.load %arg5[%c0_131, %c4_132, %c0_133, %c0_134] : memref<1x6x2x128xf32, #tpu.memory_space<vmem>>, vector<1x1x2x128xf32>
    %157 = vector.shape_cast %156 : vector<1x1x2x128xf32> to vector<2x128xf32>
    %158 = vector.shape_cast %155 : vector<2x128xf32> to vector<1x1x2x128xf32>
    tpu.vector_store %arg5[%c0_131, %c4_132, %c0_133, %c0_134], %158 {strides = array<i32>} : memref<1x6x2x128xf32, #tpu.memory_space<vmem>>, vector<1x1x2x128xf32>,
    %c0_135 = arith.constant 0 : index
    %c4_136 = arith.constant 4 : index
    %c0_137 = arith.constant 0 : index
    %c0_138 = arith.constant 0 : index
    %159 = vector.load %arg6[%c0_135, %c4_136, %c0_137, %c0_138] : memref<1x6x2x128xf32, #tpu.memory_space<vmem>>, vector<1x1x2x128xf32>
    %160 = vector.shape_cast %159 : vector<1x1x2x128xf32> to vector<2x128xf32>
    %161 = arith.addf %160, %145 : vector<2x128xf32>
    %c0_139 = arith.constant 0 : index
    %c4_140 = arith.constant 4 : index
    %c0_141 = arith.constant 0 : index
    %c0_142 = arith.constant 0 : index
    %162 = vector.load %arg6[%c0_139, %c4_140, %c0_141, %c0_142] : memref<1x6x2x128xf32, #tpu.memory_space<vmem>>, vector<1x1x2x128xf32>
    %163 = vector.shape_cast %162 : vector<1x1x2x128xf32> to vector<2x128xf32>
    %164 = vector.shape_cast %161 : vector<2x128xf32> to vector<1x1x2x128xf32>
    tpu.vector_store %arg6[%c0_139, %c4_140, %c0_141, %c0_142], %164 {strides = array<i32>} : memref<1x6x2x128xf32, #tpu.memory_space<vmem>>, vector<1x1x2x128xf32>,
    %c5_i32 = arith.constant 5 : i32
    %165 = vector.broadcast %c5_i32 : i32 to vector<2x128xi32>
    %166 = arith.cmpi eq, %4, %165 : vector<2x128xi32>
    %167 = arith.extui %166 : vector<2x128xi1> to vector<2x128xi32>
    %168 = arith.sitofp %167 : vector<2x128xi32> to vector<2x128xf32>
    %c0_143 = arith.constant 0 : index
    %c5_144 = arith.constant 5 : index
    %c0_145 = arith.constant 0 : index
    %c0_146 = arith.constant 0 : index
    %169 = vector.load %arg4[%c0_143, %c5_144, %c0_145, %c0_146] : memref<1x6x2x128xf32, #tpu.memory_space<vmem>>, vector<1x1x2x128xf32>
    %170 = vector.shape_cast %169 : vector<1x1x2x128xf32> to vector<2x128xf32>
    %171 = arith.mulf %49, %168 : vector<2x128xf32>
    %172 = arith.addf %170, %171 : vector<2x128xf32>
    %c0_147 = arith.constant 0 : index
    %c5_148 = arith.constant 5 : index
    %c0_149 = arith.constant 0 : index
    %c0_150 = arith.constant 0 : index
    %173 = vector.load %arg4[%c0_147, %c5_148, %c0_149, %c0_150] : memref<1x6x2x128xf32, #tpu.memory_space<vmem>>, vector<1x1x2x128xf32>
    %174 = vector.shape_cast %173 : vector<1x1x2x128xf32> to vector<2x128xf32>
    %175 = vector.shape_cast %172 : vector<2x128xf32> to vector<1x1x2x128xf32>
    tpu.vector_store %arg4[%c0_147, %c5_148, %c0_149, %c0_150], %175 {strides = array<i32>} : memref<1x6x2x128xf32, #tpu.memory_space<vmem>>, vector<1x1x2x128xf32>,
    %c0_151 = arith.constant 0 : index
    %c5_152 = arith.constant 5 : index
    %c0_153 = arith.constant 0 : index
    %c0_154 = arith.constant 0 : index
    %176 = vector.load %arg5[%c0_151, %c5_152, %c0_153, %c0_154] : memref<1x6x2x128xf32, #tpu.memory_space<vmem>>, vector<1x1x2x128xf32>
    %177 = vector.shape_cast %176 : vector<1x1x2x128xf32> to vector<2x128xf32>
    %178 = arith.addf %177, %49 : vector<2x128xf32>
    %c0_155 = arith.constant 0 : index
    %c5_156 = arith.constant 5 : index
    %c0_157 = arith.constant 0 : index
    %c0_158 = arith.constant 0 : index
    %179 = vector.load %arg5[%c0_155, %c5_156, %c0_157, %c0_158] : memref<1x6x2x128xf32, #tpu.memory_space<vmem>>, vector<1x1x2x128xf32>
    %180 = vector.shape_cast %179 : vector<1x1x2x128xf32> to vector<2x128xf32>
    %181 = vector.shape_cast %178 : vector<2x128xf32> to vector<1x1x2x128xf32>
    tpu.vector_store %arg5[%c0_155, %c5_156, %c0_157, %c0_158], %181 {strides = array<i32>} : memref<1x6x2x128xf32, #tpu.memory_space<vmem>>, vector<1x1x2x128xf32>,
    %c0_159 = arith.constant 0 : index
    %c5_160 = arith.constant 5 : index
    %c0_161 = arith.constant 0 : index
    %c0_162 = arith.constant 0 : index
    %182 = vector.load %arg6[%c0_159, %c5_160, %c0_161, %c0_162] : memref<1x6x2x128xf32, #tpu.memory_space<vmem>>, vector<1x1x2x128xf32>
    %183 = vector.shape_cast %182 : vector<1x1x2x128xf32> to vector<2x128xf32>
    %184 = arith.addf %183, %168 : vector<2x128xf32>
    %c0_163 = arith.constant 0 : index
    %c5_164 = arith.constant 5 : index
    %c0_165 = arith.constant 0 : index
    %c0_166 = arith.constant 0 : index
    %185 = vector.load %arg6[%c0_163, %c5_164, %c0_165, %c0_166] : memref<1x6x2x128xf32, #tpu.memory_space<vmem>>, vector<1x1x2x128xf32>
    %186 = vector.shape_cast %185 : vector<1x1x2x128xf32> to vector<2x128xf32>
    %187 = vector.shape_cast %184 : vector<2x128xf32> to vector<1x1x2x128xf32>
    tpu.vector_store %arg6[%c0_163, %c5_164, %c0_165, %c0_166], %187 {strides = array<i32>} : memref<1x6x2x128xf32, #tpu.memory_space<vmem>>, vector<1x1x2x128xf32>,
    return
  }
  func.func @transform_0(%arg0: i32, %arg1: i32) -> (i32, i32, i32, i32) {
    %c0_i32 = arith.constant 0 : i32
    %c0_i32_0 = arith.constant 0 : i32
    %c0_i32_1 = arith.constant 0 : i32
    return %arg0, %c0_i32, %arg1, %c0_i32_0 : i32, i32, i32, i32
  }
  func.func @transform_1(%arg0: i32, %arg1: i32) -> (i32, i32, i32) {
    %c0_i32 = arith.constant 0 : i32
    %c0_i32_0 = arith.constant 0 : i32
    return %arg0, %arg1, %c0_i32 : i32, i32, i32
  }
  func.func @transform_2(%arg0: i32, %arg1: i32) -> (i32, i32, i32, i32) {
    %c0_i32 = arith.constant 0 : i32
    %c0_i32_0 = arith.constant 0 : i32
    %c0_i32_1 = arith.constant 0 : i32
    %c0_i32_2 = arith.constant 0 : i32
    return %arg0, %c0_i32, %c0_i32_0, %c0_i32_1 : i32, i32, i32, i32
  }
  func.func @transform_3(%arg0: i32, %arg1: i32) -> (i32, i32, i32, i32) {
    %c0_i32 = arith.constant 0 : i32
    %c0_i32_0 = arith.constant 0 : i32
    %c0_i32_1 = arith.constant 0 : i32
    %c0_i32_2 = arith.constant 0 : i32
    return %arg0, %c0_i32, %c0_i32_0, %c0_i32_1 : i32, i32, i32, i32
  }
  func.func @transform_4(%arg0: i32, %arg1: i32) -> (i32, i32, i32, i32) {
    %c0_i32 = arith.constant 0 : i32
    %c0_i32_0 = arith.constant 0 : i32
    %c0_i32_1 = arith.constant 0 : i32
    %c0_i32_2 = arith.constant 0 : i32
    return %arg0, %c0_i32, %c0_i32_0, %c0_i32_1 : i32, i32, i32, i32
  }
}

</mosaic_0001>

<bundles_post_ra>
// kernel: tversky_loss.1
= control target key start
LH: loop header
LB: loop body
LE: loop exit
PB: predicated region body
PF: predicated region fallthrough
CT: control target
= control target key end

     0   :  { %s732_s15 = smov 0   ;;  %s734_s16 = smov 0   ;;  %s858_s0 = inlined_call_operand.vmem [shape: f32[2,6,2,128], index: 0, kind: input, shape index: {}]   ;;  %s859_s1 = inlined_call_operand.vmem [shape: s32[2,2,128], index: 1, kind: input, shape index: {}]   ;;  %s860_s2 = inlined_call_operand.vmem [shape: f32[2,6,2,128], index: 2, kind: output, shape index: {0}]   ;;  %s861_s3 = inlined_call_operand.vmem [shape: f32[2,6,2,128], index: 3, kind: output, shape index: {1}]   ;;  %s862_s4 = inlined_call_operand.vmem [shape: f32[2,6,2,128], index: 4, kind: output, shape index: {2}]  }
   0x1   :  { %s736_s17 = smov 0  }
   0x2 LB: > { %s27_s18 = sadd.s32 1, %s700_s16  ;;  %p593_p0 = scmp.ge.s32.totalorder %s704_s17, 1  ;;  %s704_s17 = sphi %s736_s17, %s15_s17   ;;  %s700_s16 = sphi %s734_s16, %s864_s16   ;;  %s696_s15 = sphi %s732_s15, %s863_s15  }
   0x3   : > { %p29_p1 = scmp.ge.s32.totalorder %s27_s18, 2  ;;  %p198_p2 = scmp.lt.s32.totalorder %s704_s17, 3 }
   0x5   : > { %s866_s18 = smov (%p29_p1, %s27_s18), 0  ;;  %p199_p3 = pnand %p593_p0, %p198_p2 }
   0x6   : > { %p244_p4 = scmp.lt.s32.totalorder (!%p199_p3), %s696_s15, 1  ;;  %v706_v0 = vmov (!%p199_p3), 0.0  }
   0x7   : > { %202 = sbr.rel (%p199_p3) target bundleno = 85 (0x55), region = 28 }
   0xe   : > { %s868_s15 = smov (!%p244_p4, %s696_s15), 1 }
   0xf   : > { %s642_s19 = smul.u32 12, %s868_s15  ;;  %s595_s20 = sshll.u32 %s868_s15, 1 }
  0x10   : > { %s258_s23 = scalar_lea.vmem %s859_s1, %s595_s20 }
  0x11   : > { %s756_s26 = scalar_lea.vmem %s860_s2, %s642_s19  ;;  %s761_s29 = scalar_lea.vmem %s861_s3, %s642_s19  ;;  %v296_v1 = vld [vmem:[%s258_s23] sm:$0x3] }
  0x12   : > { %278 = vst [vmem:[%s756_s26] sm:$0x3] %v706_v0  ;;  %279 = vst [vmem:[%s756_s26 + $0x2] sm:$0x3] %v706_v0  ;;  %s778_s6 = scalar_lea.vmem %s862_s4, %s642_s19  ;;  %s251_s9 = scalar_lea.vmem %s858_s0, %s642_s19  ;;  %vm346_vm0 = vcmp.eq.s32.totalorder %v296_v1, 0  ;;  %vm359_vm1 = vcmp.eq.s32.totalorder %v296_v1, 1  ;;  %vm375_vm2 = vcmp.eq.s32.totalorder %v296_v1, 2 }
  0x13   : > { %280 = vst [vmem:[%s756_s26 + $0x4] sm:$0x3] %v706_v0  ;;  %281 = vst [vmem:[%s756_s26 + $0x6] sm:$0x3] %v706_v0  ;;  %v297_v2 = vld [vmem:[%s251_s9] sm:$0x3] }
  0x14   : > { %282 = vst [vmem:[%s756_s26 + $0x8] sm:$0x3] %v706_v0  ;;  %283 = vst [vmem:[%s756_s26 + $0xa] sm:$0x3] %v706_v0  ;;  %v599_v3 = vld [vmem:[%s251_s9 + $0x2] sm:$0x3] }
  0x15   : > { %284 = vst [vmem:[%s761_s29] sm:$0x3] %v706_v0  ;;  %285 = vst [vmem:[%s761_s29 + $0x2] sm:$0x3] %v706_v0  ;;  %v600_v4 = vld [vmem:[%s251_s9 + $0x4] sm:$0x3]  ;;  %v308_v5 = vmax.f32 %v297_v2, %v599_v3  ;;  %v789_v11 = vsel %vm346_vm0, 1.0, %v706_v0 }
  0x16   : > { %286 = vst [vmem:[%s761_s29 + $0x4] sm:$0x3] %v706_v0  ;;  %287 = vst [vmem:[%s761_s29 + $0x6] sm:$0x3] %v706_v0  ;;  %v601_v6 = vld [vmem:[%s251_s9 + $0x6] sm:$0x3] }
  0x17   : > { %288 = vst [vmem:[%s761_s29 + $0x8] sm:$0x3] %v706_v0  ;;  %289 = vst [vmem:[%s761_s29 + $0xa] sm:$0x3] %v706_v0  ;;  %v309_v7 = vmax.f32 %v308_v5, %v600_v4  ;;  %v602_v8 = vld [vmem:[%s251_s9 + $0x8] sm:$0x3] }
  0x18   : > { %290 = vst [vmem:[%s778_s6] sm:$0x3] %v706_v0  ;;  %291 = vst [vmem:[%s778_s6 + $0x2] sm:$0x3] %v706_v0  ;;  %v603_v10 = vld [vmem:[%s251_s9 + $0xa] sm:$0x3]  ;;  %v791_v12 = vsel %vm359_vm1, 1.0, %v706_v0 }
  0x19   : > { %292 = vst [vmem:[%s778_s6 + $0x4] sm:$0x3] %v706_v0  ;;  %293 = vst [vmem:[%s778_s6 + $0x6] sm:$0x3] %v706_v0  ;;  %v310_v9 = vmax.f32 %v309_v7, %v601_v6  ;;  %vm391_vm3 = vcmp.eq.s32.totalorder %v296_v1, 3  ;;  %vm407_vm4 = vcmp.eq.s32.totalorder %v296_v1, 4 }
  0x1a   : > { %294 = vst [vmem:[%s778_s6 + $0x8] sm:$0x3] %v706_v0  ;;  %295 = vst [vmem:[%s778_s6 + $0xa] sm:$0x3] %v706_v0  ;;  %vm423_vm5 = vcmp.eq.s32.totalorder %v296_v1, 5  ;;  %v797_v18 = vsel %vm375_vm2, 1.0, %v706_v0 }
  0x1b   : > { %v311_v13 = vmax.f32 %v310_v9, %v602_v8  ;;  %v801_v22 = vsel %vm391_vm3, 1.0, %v706_v0  ;;  %v807_v25 = vsel %vm407_vm4, 1.0, %v706_v0  ;;  %v810_v27 = vsel %vm423_vm5, 1.0, %v706_v0 }
  0x1c   : > { %v353_v58 = vld [vmem:[%s761_s29] sm:$0x3]  ;;  %v608_v59 = vld [vmem:[%s761_s29 + $0x2] sm:$0x3] }
  0x1d   : > { %v312_v20 = vmax.f32 %v311_v13, %v603_v10  ;;  %v615_v63 = vld [vmem:[%s761_s29 + $0x4] sm:$0x3]  ;;  %v622_v1 = vld [vmem:[%s761_s29 + $0x6] sm:$0x3] }
  0x1e   : > { %v629_v5 = vld [vmem:[%s761_s29 + $0x8] sm:$0x3]  ;;  %v613_v13 = vld [vmem:[%s756_s26 + $0x4] sm:$0x3] }
  0x1f   : > { %v356_v14 = vld [vmem:[%s778_s6] sm:$0x3]  ;;  %v610_v15 = vld [vmem:[%s778_s6 + $0x2] sm:$0x3]  ;;  %v313_v28 = vsub.f32 %v297_v2, %v312_v20  ;;  %v316_v29 = vsub.f32 %v599_v3, %v312_v20  ;;  %v319_v30 = vsub.f32 %v600_v4, %v312_v20  ;;  %v322_v31 = vsub.f32 %v601_v6, %v312_v20 }
  0x20   : > { %v357_v16 = vadd.f32 %v789_v11, %v356_v14  ;;  %v373_v17 = vadd.f32 %v610_v15, %v791_v12  ;;  %v617_v19 = vld [vmem:[%s778_s6 + $0x4] sm:$0x3]  ;;  %v624_v23 = vld [vmem:[%s778_s6 + $0x6] sm:$0x3]  ;;  %v325_v33 = vsub.f32 %v602_v8, %v312_v20  ;;  %v328_v40 = vsub.f32 %v603_v10, %v312_v20  ;;  %v349_v2 = vld [vmem:[%s756_s26] sm:$0x3] }
  0x21   : > { %v389_v21 = vadd.f32 %v617_v19, %v797_v18  ;;  %v405_v24 = vadd.f32 %v624_v23, %v801_v22  ;;  %v631_v26 = vld [vmem:[%s778_s6 + $0x8] sm:$0x3]  ;;  %v638_v32 = vld [vmem:[%s778_s6 + $0xa] sm:$0x3]  ;;  %v314_v36 = vmul.f32 1.442695, %v313_v28 }
  0x22   : > { %358 = vst [vmem:[%s778_s6] sm:$0x3] %v357_v16  ;;  %611 = vst [vmem:[%s778_s6 + $0x2] sm:$0x3] %v373_v17  ;;  %v421_v34 = vadd.f32 %v631_v26, %v807_v25  ;;  %v437_v35 = vadd.f32 %v638_v32, %v810_v27  ;;  %v317_v37 = vmul.f32 1.442695, %v316_v29 }
  0x23   : > { %618 = vst [vmem:[%s778_s6 + $0x4] sm:$0x3] %v389_v21  ;;  %625 = vst [vmem:[%s778_s6 + $0x6] sm:$0x3] %v405_v24  ;;  %v320_v38 = vmul.f32 1.442695, %v319_v30  ;;  %668 = vpow2.f32 %v314_v36 }
  0x24   : > { %v323_v39 = vmul.f32 1.442695, %v322_v31  ;;  %632 = vst [vmem:[%s778_s6 + $0x8] sm:$0x3] %v421_v34  ;;  %639 = vst [vmem:[%s778_s6 + $0xa] sm:$0x3] %v437_v35  ;;  %670 = vpow2.f32 %v317_v37 }
  0x25   : > { %v326_v41 = vmul.f32 1.442695, %v325_v33  ;;  %672 = vpow2.f32 %v320_v38  ;;  %v329_v42 = vmul.f32 1.442695, %v328_v40  ;;  %v606_v3 = vld [vmem:[%s756_s26 + $0x2] sm:$0x3] }
  0x26   : > { %674 = vpow2.f32 %v323_v39  ;;  %v620_v14 = vld [vmem:[%s756_s26 + $0x6] sm:$0x3]  ;;  %v636_v15 = vld [vmem:[%s761_s29 + $0xa] sm:$0x3]  ;;  %v627_v21 = vld [vmem:[%s756_s26 + $0x8] sm:$0x3] }
  0x27   : > { %676 = vpow2.f32 %v326_v41 }
  0x28   : > { %678 = vpow2.f32 %v329_v42 }
  0x2d   : > { %v669_v43 = vpop.eup %668 }
  0x2e   : > { %v671_v44 = vpop.eup %670 }
  0x2f   : > { %v673_v45 = vpop.eup %672  ;;  %v331_v46 = vadd.f32 %v671_v44, %v669_v43 }
  0x30   : > { %v675_v47 = vpop.eup %674 }
  0x31   : > { %v332_v48 = vadd.f32 %v673_v45, %v331_v46  ;;  %v677_v49 = vpop.eup %676 }
  0x32   : > { %v679_v51 = vpop.eup %678 }
  0x33   : > { %v333_v50 = vadd.f32 %v675_v47, %v332_v48 }
  0x35   : > { %v334_v52 = vadd.f32 %v677_v49, %v333_v50 }
  0x37   : > { %v335_v53 = vadd.f32 %v679_v51, %v334_v52 }
  0x39   : > { %680 = vrcp.f32 %v335_v53 }
  0x43   : > { %v681_v54 = vpop.eup %680 }
  0x44   : > { %v337_v55 = vmul.f32 %v681_v54, %v335_v53 }
  0x46   : > { %v338_v56 = vsub.f32 2.0, %v337_v55 }
  0x48   : > { %v339_v57 = vmul.f32 %v681_v54, %v338_v56 }
  0x4a   : > { %v340_v60 = vmul.f32 %v669_v43, %v339_v57  ;;  %v341_v61 = vmul.f32 %v671_v44, %v339_v57  ;;  %v342_v62 = vmul.f32 %v673_v45, %v339_v57  ;;  %v343_v0 = vmul.f32 %v675_v47, %v339_v57 }
  0x4b   : > { %v344_v4 = vmul.f32 %v677_v49, %v339_v57  ;;  %v345_v6 = vmul.f32 %v679_v51, %v339_v57 }
  0x4c   : > { %v350_v7 = vmul.f32 %v789_v11, %v340_v60  ;;  %v354_v8 = vadd.f32 %v353_v58, %v340_v60  ;;  %v364_v9 = vmul.f32 %v791_v12, %v341_v61  ;;  %v369_v10 = vadd.f32 %v608_v59, %v341_v61 }
  0x4d   : > { %v380_v16 = vmul.f32 %v797_v18, %v342_v62  ;;  %v385_v17 = vadd.f32 %v615_v63, %v342_v62  ;;  %v396_v19 = vmul.f32 %v801_v22, %v343_v0  ;;  %v401_v20 = vadd.f32 %v622_v1, %v343_v0  ;;  %v634_v18 = vld [vmem:[%s756_s26 + $0xa] sm:$0x3] }
  0x4e   : > { %v351_v11 = vadd.f32 %v350_v7, %v349_v2  ;;  %355 = vst [vmem:[%s761_s29] sm:$0x3] %v354_v8  ;;  %v365_v12 = vadd.f32 %v606_v3, %v364_v9  ;;  %609 = vst [vmem:[%s761_s29 + $0x2] sm:$0x3] %v369_v10  ;;  %v412_v23 = vmul.f32 %v807_v25, %v344_v4 }
  0x4f   : > { %v417_v24 = vadd.f32 %v629_v5, %v344_v4  ;;  %v381_v26 = vadd.f32 %v613_v13, %v380_v16  ;;  %616 = vst [vmem:[%s761_s29 + $0x4] sm:$0x3] %v385_v17  ;;  %v397_v22 = vadd.f32 %v620_v14, %v396_v19  ;;  %623 = vst [vmem:[%s761_s29 + $0x6] sm:$0x3] %v401_v20 }
  0x50   : > { %v428_v28 = vmul.f32 %v810_v27, %v345_v6  ;;  %v433_v29 = vadd.f32 %v636_v15, %v345_v6  ;;  %352 = vst [vmem:[%s756_s26] sm:$0x3] %v351_v11  ;;  %607 = vst [vmem:[%s756_s26 + $0x2] sm:$0x3] %v365_v12  ;;  %v413_v30 = vadd.f32 %v627_v21, %v412_v23 }
  0x51   : > { %630 = vst [vmem:[%s761_s29 + $0x8] sm:$0x3] %v417_v24  ;;  %614 = vst [vmem:[%s756_s26 + $0x4] sm:$0x3] %v381_v26 }
  0x52   : > { %621 = vst [vmem:[%s756_s26 + $0x6] sm:$0x3] %v397_v22  ;;  %v429_v31 = vadd.f32 %v634_v18, %v428_v28  ;;  %637 = vst [vmem:[%s761_s29 + $0xa] sm:$0x3] %v433_v29 }
  0x53   : > { %628 = vst [vmem:[%s756_s26 + $0x8] sm:$0x3] %v413_v30 }
  0x54   : > { %635 = vst [vmem:[%s756_s26 + $0xa] sm:$0x3] %v429_v31 }
  0x55 PF: > { %s15_s17 = sadd.s32 1, %s704_s17   ;;  %s863_s15 = smov %s700_s16 }
  0x56   : > { %p12_p5 = scmp.ge.s32.totalorder %s15_s17, 4   ;;  %s864_s16 = smov %s866_s18 }
  0x58   :  { %14 = sbr.rel (!%p12_p5) target bundleno = 2 (0x2), region = 109 }

</bundles_post_ra>
